<compile_context>
chip_gen: v6e
topology: v6e:2x2x1
jax: 0.10.0
libtpu: 0.0.40
codegen_flags: <defaults>
</compile_context>

<pallas_src>
import functools

import jax
import jax.numpy as jnp
from jax.experimental import pallas as pl
from jax.experimental.pallas import tpu as pltpu

# ---- configuration (consistent with the module's __init__) ----
D = 4              # dof_ndim  (q_ndim)
HID = 32           # hidden_size
NUM_LAYERS = 2     # num_layers
EPS = 1e-4         # diag noise used in Minv
BATCH = 24         # N (demo; exercises the 2-step grid + tail padding)

H3 = 3 * HID                 # fused hidden width  (nn | pot | mass)
H2B = 2 * HID                # fused backward hidden width (pot | mass)
OUT = 2 * D + 1 + D * D      # fused head width: [nn_dyn | V | A_flat]
DD = D * D

# ---- packed bf16 weight slab layout (row offsets multiples of 16, 128 lanes) ----
SLAB_LANES = 128
R_W1 = 0                     # (2D, 3H)    fused layer-1
R_W2 = 16                    # (3H, 3H)    fused layer-2 (block-diagonal)
R_W3 = 112                   # (3H, OUT)   fused head
R_B1 = 208                   # (1, 3H)
R_B2 = 224                   # (1, 3H)
R_B3 = 240                   # (1, OUT)
R_W3BT = 256                 # (D*D, 2H)   [0 | mW2^T]            (backward head, pre-T)
R_B3B = 272                  # (1, 2H)     [vW2^T | 0]            (V-cotangent bias)
R_W2BT = 288                 # (2H, 2H)    blockdiag(vW1^T, mW1^T)
R_W1BT = 352                 # (2H, D)     [vW0 | mW0]^T
R_SROW = 416                 # (D*D, D)    row-group reduction
R_SCOL = 432                 # (D*D, D)    col-group reduction
R_EP = 448                   # (D, D*D)    p_j lane replication
R_EU = 464                   # (D, D*D)    u_i lane replication
R_UPPER = 480                # (1, D*D)    strict-upper mask
R_DIAG = 496                 # (1, D*D)    diagonal mask
SLAB_ROWS = 512              # 512 x 128 x bf16 = 128 KiB


# ----------------------------- Pallas kernel ------------------------------
def mixture_hnn_kernel(z_ref, w_ref, out_ref):
  f32 = jnp.float32
  bf16 = jnp.bfloat16
  H = HID
  dot = functools.partial(jnp.dot, preferred_element_type=f32)

  z = z_ref[...].astype(f32)                       # (BN, 2D)
  p = z[:, D:2 * D]                                # (BN, D)

  # bf16 weight/constant windows (static, 16-row-aligned slices of the slab)
  W1 = w_ref[R_W1:R_W1 + 2 * D, 0:H3]              # (2D, 3H)
  W2 = w_ref[R_W2:R_W2 + H3, 0:H3]                 # (3H, 3H)
  W3 = w_ref[R_W3:R_W3 + H3, 0:OUT]                # (3H, OUT)
  b1 = w_ref[R_B1:R_B1 + 1, 0:H3].astype(f32)
  b2 = w_ref[R_B2:R_B2 + 1, 0:H3].astype(f32)
  b3 = w_ref[R_B3:R_B3 + 1, 0:OUT].astype(f32)
  W3bT = w_ref[R_W3BT:R_W3BT + DD, 0:H2B]          # (D*D, 2H)
  b3b = w_ref[R_B3B:R_B3B + 1, 0:H2B].astype(f32)  # (1, 2H)
  W2bT = w_ref[R_W2BT:R_W2BT + H2B, 0:H2B]         # (2H, 2H)
  W1bT = w_ref[R_W1BT:R_W1BT + H2B, 0:D]           # (2H, D)
  S_row = w_ref[R_SROW:R_SROW + DD, 0:D]           # (D*D, D)
  S_col = w_ref[R_SCOL:R_SCOL + DD, 0:D]           # (D*D, D)
  E_p = w_ref[R_EP:R_EP + D, 0:DD]                 # (D, D*D)
  E_u = w_ref[R_EU:R_EU + D, 0:DD]                 # (D, D*D)
  upper = w_ref[R_UPPER:R_UPPER + 1, 0:DD].astype(f32)
  diag = w_ref[R_DIAG:R_DIAG + 1, 0:DD].astype(f32)

  # ---------------- fused forward: [nn | potential | mass] ----------------
  zb = z.astype(bf16)
  H1 = jnp.tanh(dot(zb, W1) + b1)                  # (BN, 3H) f32
  H1b = H1.astype(bf16)
  H2 = jnp.tanh(dot(H1b, W2) + b2)                 # (BN, 3H) f32
  H2b = H2.astype(bf16)
  Y = dot(H2b, W3) + b3                            # (BN, 2D+1+D*D) f32
  nn_dyn = Y[:, 0:2 * D]                           # NN branch output
  A = Y[:, 2 * D + 1:]                             # (BN, D*D), A[:, i*D+j] = A_ij

  # ------------- tril_Minv structure in the flat (i*D+j) layout -------------
  # NOTE: softplus/sigmoid run on all D*D columns though only the D diagonal
  # ones are used; harmless (overflow-safe) and the EUP slot has slack.
  R = upper * A + diag * jax.nn.softplus(A)

  # kinetic term T = 0.5 p^T (L L^T + eps I) p, with L^T p = R p
  p_tile = dot(p.astype(bf16), E_p)                # p_tile[:, i*D+j] = p_j
  u = dot((R * p_tile).astype(bf16), S_row)        # u_i = sum_j R_ij p_j (= L^T p)
  u_rep = dot(u.astype(bf16), E_u)                 # u_rep[:, i*D+j] = u_i
  dH_dp = dot((R * u_rep).astype(bf16), S_col) + EPS * p   # Minv p = R^T u + eps p

  # dT/dA via dT/dR_ij = u_i p_j, then the triu/softplus structure
  G = u_rep * p_tile
  dT_dA = upper * G + diag * (G * jax.nn.sigmoid(A))

  # ------- fused backward through [potential | mass] (cotangents: V->1, A->dT_dA)
  # V's unit cotangent is folded into the bias row b3b (= vW2^T), no ones concat.
  dH2 = dot(dT_dA.astype(bf16), W3bT) + b3b        # (BN, 2H)
  h2pm = H2[:, H:]
  dA2 = dH2 * (1.0 - h2pm * h2pm)
  dH1 = dot(dA2.astype(bf16), W2bT)                # (BN, 2H)
  h1pm = H1[:, H:]
  dA1 = dH1 * (1.0 - h1pm * h1pm)
  dH_dq = dot(dA1.astype(bf16), W1bT)              # (BN, D) = dV/dq + dT/dq

  # dz/dt = J grad_z H + NN  — write the two halves directly (no lane concat)
  out_ref[:, 0:D] = (nn_dyn[:, 0:D] + dH_dp).astype(out_ref.dtype)
  out_ref[:, D:2 * D] = (nn_dyn[:, D:2 * D] - dH_dq).astype(out_ref.dtype)


# ------------------------------ wrapper -----------------------------------
def _round_up(x, m):
  return ((x + m - 1) // m) * m


def _choose_batch_tile(n):
  # Max 1024 rows: f32/bf16 intermediates at 1024 rows (~3-4 MiB live) fit
  # v5e's 16 MiB scoped-VMEM default and leave headroom on v7x's 64 MiB VMEM.
  # Once N >= 16 keep >= 2 grid steps so both v7x TensorCores get work;
  # per-step overhead (~0.35 us) is negligible at these tile sizes.
  MAX_BN = 1024
  if n < 16:
    return _round_up(max(n, 1), 8)
  return min(MAX_BN, _round_up(pl.cdiv(n, 2), 8))


def pack_params(params):
  """One-time host-side packing of all weights into a single bf16 slab."""
  (nW0, nb0), (nW1, nb1), (nW2, nb2) = params["nn"]
  (vW0, vb0), (vW1, vb1), (vW2, vb2) = params["pot"]
  (mW0, mb0), (mW1, mb1), (mW2, mb2) = params["mass"]
  H = HID
  f32 = jnp.float32

  # fused forward weights (p-columns of pot/mass layer-1 stay zero)
  W1 = jnp.zeros((2 * D, H3), f32)
  W1 = W1.at[:, 0:H].set(nW0).at[0:D, H:2 * H].set(vW0).at[0:D, 2 * H:].set(mW0)
  b1 = jnp.concatenate([nb0, vb0, mb0], axis=1)

  W2 = jnp.zeros((H3, H3), f32)
  W2 = W2.at[0:H, 0:H].set(nW1).at[H:2 * H, H:2 * H].set(vW1).at[2 * H:, 2 * H:].set(mW1)
  b2 = jnp.concatenate([nb1, vb1, mb1], axis=1)

  W3 = jnp.zeros((H3, OUT), f32)
  W3 = W3.at[0:H, 0:2 * D].set(nW2)
  W3 = W3.at[H:2 * H, 2 * D:2 * D + 1].set(vW2)
  W3 = W3.at[2 * H:, 2 * D + 1:].set(mW2)
  b3 = jnp.concatenate([nb2, vb2, mb2], axis=1)

  # fused backward weights, PRE-TRANSPOSED (canonical (K, N) MXU layout)
  W1bT = jnp.concatenate([vW0, mW0], axis=1).T                     # (2H, D)
  W2bT = jnp.zeros((H2B, H2B), f32)
  W2bT = W2bT.at[0:H, 0:H].set(vW1.T).at[H:, H:].set(mW1.T)        # (2H, 2H)
  W3bT = jnp.zeros((DD, H2B), f32).at[:, H:].set(mW2.T)            # (D*D, 2H)
  b3b = jnp.zeros((1, H2B), f32).at[0, 0:H].set(vW2[:, 0])         # V cotangent = 1

  # structural constants (0/1, exact in bf16)
  col = jnp.arange(DD)
  i_idx, j_idx = col // D, col % D
  S_row = (i_idx[:, None] == jnp.arange(D)[None, :]).astype(f32)   # (D*D, D)
  S_col = (j_idx[:, None] == jnp.arange(D)[None, :]).astype(f32)   # (D*D, D)
  E_p = S_col.T                                                    # (D, D*D)
  E_u = S_row.T                                                    # (D, D*D)
  upper = (j_idx > i_idx).astype(f32)[None, :]
  diagm = (j_idx == i_idx).astype(f32)[None, :]

  slab = jnp.zeros((SLAB_ROWS, SLAB_LANES), f32)
  slab = slab.at[R_W1:R_W1 + 2 * D, 0:H3].set(W1)
  slab = slab.at[R_W2:R_W2 + H3, 0:H3].set(W2)
  slab = slab.at[R_W3:R_W3 + H3, 0:OUT].set(W3)
  slab = slab.at[R_B1:R_B1 + 1, 0:H3].set(b1)
  slab = slab.at[R_B2:R_B2 + 1, 0:H3].set(b2)
  slab = slab.at[R_B3:R_B3 + 1, 0:OUT].set(b3)
  slab = slab.at[R_W3BT:R_W3BT + DD, 0:H2B].set(W3bT)
  slab = slab.at[R_B3B:R_B3B + 1, 0:H2B].set(b3b)
  slab = slab.at[R_W2BT:R_W2BT + H2B, 0:H2B].set(W2bT)
  slab = slab.at[R_W1BT:R_W1BT + H2B, 0:D].set(W1bT)
  slab = slab.at[R_SROW:R_SROW + DD, 0:D].set(S_row)
  slab = slab.at[R_SCOL:R_SCOL + DD, 0:D].set(S_col)
  slab = slab.at[R_EP:R_EP + D, 0:DD].set(E_p)
  slab = slab.at[R_EU:R_EU + D, 0:DD].set(E_u)
  slab = slab.at[R_UPPER:R_UPPER + 1, 0:DD].set(upper)
  slab = slab.at[R_DIAG:R_DIAG + 1, 0:DD].set(diagm)
  return slab.astype(jnp.bfloat16)


def mixture_hnn_forward(t, z, slab):
  """forward(t, z): N x 2D -> N x 2D time derivatives (t unused by the math)."""
  assert t.ndim == 0 and z.ndim == 2
  N, D2 = z.shape
  assert D2 == 2 * D
  assert slab.shape == (SLAB_ROWS, SLAB_LANES) and slab.dtype == jnp.bfloat16

  BN = _choose_batch_tile(N)
  n_pad = _round_up(N, BN)
  zp = z if n_pad == N else jnp.pad(z, ((0, n_pad - N), (0, 0)))
  grid = (n_pad // BN,)

  # advisory cost model: fused fwd + fused bwd matmuls + structural dots
  flops_per_row = 2 * (2 * D * H3 + H3 * H3 + H3 * OUT
                       + 2 * (D * DD) + 2 * (DD * D)
                       + DD * H2B + H2B * H2B + H2B * D)
  cost = pl.CostEstimate(
      flops=int(n_pad * flops_per_row),
      transcendentals=int(n_pad * (2 * H3 + 3 * DD)),
      bytes_accessed=int(n_pad * 2 * D * 4 * 2 + SLAB_ROWS * SLAB_LANES * 2),
  )

  out = pl.pallas_call(
      mixture_hnn_kernel,
      out_shape=jax.ShapeDtypeStruct((n_pad, 2 * D), z.dtype),
      grid=grid,
      in_specs=[
          pl.BlockSpec((BN, 2 * D), lambda i: (i, 0)),
          # constant index_map -> slab stays VMEM-resident across grid steps
          pl.BlockSpec((SLAB_ROWS, SLAB_LANES), lambda i: (0, 0)),
      ],
      out_specs=pl.BlockSpec((BN, 2 * D), lambda i: (i, 0)),
      compiler_params=pltpu.CompilerParams(dimension_semantics=("parallel",)),
      cost_estimate=cost,
  )(zp, slab)
  return out if n_pad == N else out[:N]


# --------------------- deterministic parameter init -----------------------
def _init_linear(key, fan_in, fan_out):
  kw, kb = jax.random.split(key)
  W = jax.random.normal(kw, (fan_in, fan_out), jnp.float32) / jnp.sqrt(float(fan_in))
  b = 0.1 * jax.random.normal(kb, (1, fan_out), jnp.float32)
  return W, b


def init_params(key):
  def make_net(key, chs):
    layers = []
    for i in range(len(chs) - 1):
      key, sub = jax.random.split(key)
      layers.append(_init_linear(sub, chs[i], chs[i + 1]))
    return layers

  k_nn, k_pot, k_mass = jax.random.split(key, 3)
  return {
      "nn": make_net(k_nn, [2 * D] + NUM_LAYERS * [HID] + [2 * D]),
      "pot": make_net(k_pot, [D] + NUM_LAYERS * [HID] + [1]),
      "mass": make_net(k_mass, [D] + NUM_LAYERS * [HID] + [D * D]),
  }


# ----------------------- pure-JAX reference (check) ------------------------
def _mlp(x, layers):
  *hidden, (Wl, bl) = layers
  h = x
  for W, b in hidden:
    h = jnp.tanh(h @ W + b)
  return h @ Wl + bl


def reference_forward(t, z, params):
  nn_dyn = _mlp(z, params["nn"])

  def hamiltonian_sum(z_):
    q_, p_ = z_[:, :D], z_[:, D:]
    V = _mlp(q_, params["pot"])[:, 0]
    A = _mlp(q_, params["mass"]).reshape(-1, D, D)
    sp_diag = jax.nn.softplus(jnp.diagonal(A, axis1=-2, axis2=-1))
    Rm = jnp.triu(A, 1) + sp_diag[:, :, None] * jnp.eye(D, dtype=z_.dtype)
    L = jnp.swapaxes(Rm, -1, -2)
    Minv = L @ jnp.swapaxes(L, -1, -2) + EPS * jnp.eye(D, dtype=z_.dtype)
    T = 0.5 * jnp.einsum("ni,nij,nj->n", p_, Minv, p_)
    return jnp.sum(T + V)

  rg = jax.grad(hamiltonian_sum)(z)
  dHdq, dHdp = rg[:, :D], rg[:, D:]
  hnn_dyn = jnp.concatenate([dHdp, -dHdq], axis=-1)
  return hnn_dyn + nn_dyn


if __name__ == "__main__":
  key = jax.random.PRNGKey(0)
  k_z, k_params = jax.random.split(key)

  params = init_params(k_params)
  slab = pack_params(params)     # done ONCE, reused across forward() calls
  z = jax.random.normal(k_z, (BATCH, 2 * D), jnp.float32)
  t = jnp.zeros((), jnp.float32)

  out = mixture_hnn_forward(t, z, slab)
  out = jax.block_until_ready(out)

  # The kernel feeds the MXU bf16 operands (f32 accumulation), so the packed
  # weights are bf16 by design.  Compare against the f32 reference evaluated
  # with the same bf16-rounded weights: this isolates kernel-implementation
  # error (activation roundings, well under 1%) from the deliberate weight
  # quantization.
  params_bf = jax.tree_util.tree_map(
      lambda x: x.astype(jnp.bfloat16).astype(jnp.float32), params)
  ref = reference_forward(t, z, params_bf)
  if not jnp.allclose(out, ref, rtol=2e-2, atol=2e-2):
    max_err = float(jnp.max(jnp.abs(out - ref)))
    raise AssertionError(f"Pallas kernel mismatch vs reference, max abs err = {max_err}")

  print("KERNEL_OK")
</pallas_src>

<mosaic_0001>
module attributes {stable_mosaic.version = 11 : i64} {
  func.func @mixture_hnn_kernel(%arg0: i32, %arg1: memref<16x8xf32, #tpu.memory_space<vmem>>, %arg2: memref<512x128xbf16, #tpu.memory_space<vmem>>, %arg3: memref<16x8xf32, #tpu.memory_space<vmem>>) attributes {dimension_semantics = [#tpu.dimension_semantics<parallel>], iteration_bounds = array<i64: 2>, scalar_prefetch = 0 : i64, scratch_operands = 0 : i64, tpu.core_type = #tpu.core_type<tc>, window_params = [{transform_indices = @transform_0, window_bounds = array<i64: 16, 8>}, {pipeline_mode = #tpu.pipeline_mode<synchronous>, transform_indices = @transform_1, window_bounds = array<i64: 512, 128>}, {transform_indices = @transform_2, window_bounds = array<i64: 16, 8>}]} {
    %c0 = arith.constant 0 : index
    %c0_0 = arith.constant 0 : index
    %0 = vector.load %arg1[%c0, %c0_0] : memref<16x8xf32, #tpu.memory_space<vmem>>, vector<16x8xf32>
    %1 = vector.extract_strided_slice %0 {offsets = [0, 4], sizes = [16, 4], strides = [1, 1]} : vector<16x8xf32> to vector<16x4xf32>
    %c0_1 = arith.constant 0 : index
    %c0_2 = arith.constant 0 : index
    %2 = vector.load %arg2[%c0_1, %c0_2] : memref<512x128xbf16, #tpu.memory_space<vmem>>, vector<8x96xbf16>
    %c16 = arith.constant 16 : index
    %c0_3 = arith.constant 0 : index
    %3 = vector.load %arg2[%c16, %c0_3] : memref<512x128xbf16, #tpu.memory_space<vmem>>, vector<96x96xbf16>
    %c112 = arith.constant 112 : index
    %c0_4 = arith.constant 0 : index
    %4 = vector.load %arg2[%c112, %c0_4] : memref<512x128xbf16, #tpu.memory_space<vmem>>, vector<96x25xbf16>
    %c208 = arith.constant 208 : index
    %c0_5 = arith.constant 0 : index
    %5 = vector.load %arg2[%c208, %c0_5] : memref<512x128xbf16, #tpu.memory_space<vmem>>, vector<1x96xbf16>
    %6 = arith.extf %5 : vector<1x96xbf16> to vector<1x96xf32>
    %c224 = arith.constant 224 : index
    %c0_6 = arith.constant 0 : index
    %7 = vector.load %arg2[%c224, %c0_6] : memref<512x128xbf16, #tpu.memory_space<vmem>>, vector<1x96xbf16>
    %8 = arith.extf %7 : vector<1x96xbf16> to vector<1x96xf32>
    %c240 = arith.constant 240 : index
    %c0_7 = arith.constant 0 : index
    %9 = vector.load %arg2[%c240, %c0_7] : memref<512x128xbf16, #tpu.memory_space<vmem>>, vector<1x25xbf16>
    %10 = arith.extf %9 : vector<1x25xbf16> to vector<1x25xf32>
    %c256 = arith.constant 256 : index
    %c0_8 = arith.constant 0 : index
    %11 = vector.load %arg2[%c256, %c0_8] : memref<512x128xbf16, #tpu.memory_space<vmem>>, vector<16x64xbf16>
    %c272 = arith.constant 272 : index
    %c0_9 = arith.constant 0 : index
    %12 = vector.load %arg2[%c272, %c0_9] : memref<512x128xbf16, #tpu.memory_space<vmem>>, vector<1x64xbf16>
    %13 = arith.extf %12 : vector<1x64xbf16> to vector<1x64xf32>
    %c288 = arith.constant 288 : index
    %c0_10 = arith.constant 0 : index
    %14 = vector.load %arg2[%c288, %c0_10] : memref<512x128xbf16, #tpu.memory_space<vmem>>, vector<64x64xbf16>
    %c352 = arith.constant 352 : index
    %c0_11 = arith.constant 0 : index
    %15 = vector.load %arg2[%c352, %c0_11] : memref<512x128xbf16, #tpu.memory_space<vmem>>, vector<64x4xbf16>
    %c416 = arith.constant 416 : index
    %c0_12 = arith.constant 0 : index
    %16 = vector.load %arg2[%c416, %c0_12] : memref<512x128xbf16, #tpu.memory_space<vmem>>, vector<16x4xbf16>
    %c432 = arith.constant 432 : index
    %c0_13 = arith.constant 0 : index
    %17 = vector.load %arg2[%c432, %c0_13] : memref<512x128xbf16, #tpu.memory_space<vmem>>, vector<16x4xbf16>
    %c448 = arith.constant 448 : index
    %c0_14 = arith.constant 0 : index
    %18 = vector.load %arg2[%c448, %c0_14] : memref<512x128xbf16, #tpu.memory_space<vmem>>, vector<4x16xbf16>
    %c464 = arith.constant 464 : index
    %c0_15 = arith.constant 0 : index
    %19 = vector.load %arg2[%c464, %c0_15] : memref<512x128xbf16, #tpu.memory_space<vmem>>, vector<4x16xbf16>
    %c480 = arith.constant 480 : index
    %c0_16 = arith.constant 0 : index
    %20 = vector.load %arg2[%c480, %c0_16] : memref<512x128xbf16, #tpu.memory_space<vmem>>, vector<1x16xbf16>
    %21 = arith.extf %20 : vector<1x16xbf16> to vector<1x16xf32>
    %c496 = arith.constant 496 : index
    %c0_17 = arith.constant 0 : index
    %22 = vector.load %arg2[%c496, %c0_17] : memref<512x128xbf16, #tpu.memory_space<vmem>>, vector<1x16xbf16>
    %23 = arith.extf %22 : vector<1x16xbf16> to vector<1x16xf32>
    %24 = arith.truncf %0 : vector<16x8xf32> to vector<16x8xbf16>
    %cst = arith.constant dense<0.000000e+00> : vector<16x96xf32>
    %25 = tpu.matmul %24, %2, %cst {dimension_numbers = #tpu.dot_dimension_numbers<[1], [0], [0], [1], [0, 0, 1, 1], [], []>} : vector<16x8xbf16>, vector<8x96xbf16>, vector<16x96xf32> -> vector<16x96xf32>
    %26 = vector.broadcast %6 : vector<1x96xf32> to vector<16x96xf32>
    %27 = arith.addf %25, %26 : vector<16x96xf32>
    %28 = math.tanh %27 : vector<16x96xf32>
    %29 = arith.truncf %28 : vector<16x96xf32> to vector<16x96xbf16>
    %cst_18 = arith.constant dense<0.000000e+00> : vector<16x96xf32>
    %30 = tpu.matmul %29, %3, %cst_18 {dimension_numbers = #tpu.dot_dimension_numbers<[1], [0], [0], [1], [0, 0, 1, 1], [], []>} : vector<16x96xbf16>, vector<96x96xbf16>, vector<16x96xf32> -> vector<16x96xf32>
    %31 = vector.broadcast %8 : vector<1x96xf32> to vector<16x96xf32>
    %32 = arith.addf %30, %31 : vector<16x96xf32>
    %33 = math.tanh %32 : vector<16x96xf32>
    %34 = arith.truncf %33 : vector<16x96xf32> to vector<16x96xbf16>
    %cst_19 = arith.constant dense<0.000000e+00> : vector<16x25xf32>
    %35 = tpu.matmul %34, %4, %cst_19 {dimension_numbers = #tpu.dot_dimension_numbers<[1], [0], [0], [1], [0, 0, 1, 1], [], []>} : vector<16x96xbf16>, vector<96x25xbf16>, vector<16x25xf32> -> vector<16x25xf32>
    %36 = vector.broadcast %10 : vector<1x25xf32> to vector<16x25xf32>
    %37 = arith.addf %35, %36 : vector<16x25xf32>
    %38 = vector.extract_strided_slice %37 {offsets = [0, 0], sizes = [16, 8], strides = [1, 1]} : vector<16x25xf32> to vector<16x8xf32>
    %39 = vector.extract_strided_slice %37 {offsets = [0, 9], sizes = [16, 16], strides = [1, 1]} : vector<16x25xf32> to vector<16x16xf32>
    %40 = vector.broadcast %21 : vector<1x16xf32> to vector<16x16xf32>
    %41 = arith.mulf %40, %39 : vector<16x16xf32>
    %cst_20 = arith.constant 0.000000e+00 : f32
    %42 = vector.broadcast %cst_20 : f32 to vector<16x16xf32>
    %43 = arith.maximumf %39, %42 : vector<16x16xf32>
    %44 = vector.broadcast %cst_20 : f32 to vector<16x16xf32>
    %45 = arith.subf %39, %44 : vector<16x16xf32>
    %46 = arith.cmpf one, %45, %45 : vector<16x16xf32>
    %47 = vector.broadcast %cst_20 : f32 to vector<16x16xf32>
    %48 = arith.addf %39, %47 : vector<16x16xf32>
    %49 = math.absf %45 : vector<16x16xf32>
    %cst_21 = arith.constant 0.000000e+00 : f32
    %50 = vector.broadcast %cst_21 : f32 to vector<16x16xf32>
    %51 = arith.subf %50, %49 : vector<16x16xf32>
    %52 = math.exp %51 : vector<16x16xf32>
    %53 = math.log1p %52 : vector<16x16xf32>
    %54 = arith.addf %43, %53 : vector<16x16xf32>
    %55 = arith.select %46, %48, %54 : vector<16x16xi1>, vector<16x16xf32>
    %56 = vector.broadcast %23 : vector<1x16xf32> to vector<16x16xf32>
    %57 = arith.mulf %56, %55 : vector<16x16xf32>
    %58 = arith.addf %41, %57 : vector<16x16xf32>
    %59 = arith.truncf %1 : vector<16x4xf32> to vector<16x4xbf16>
    %cst_22 = arith.constant dense<0.000000e+00> : vector<16x16xf32>
    %60 = tpu.matmul %59, %18, %cst_22 {dimension_numbers = #tpu.dot_dimension_numbers<[1], [0], [0], [1], [0, 0, 1, 1], [], []>} : vector<16x4xbf16>, vector<4x16xbf16>, vector<16x16xf32> -> vector<16x16xf32>
    %61 = arith.mulf %58, %60 : vector<16x16xf32>
    %62 = arith.truncf %61 : vector<16x16xf32> to vector<16x16xbf16>
    %cst_23 = arith.constant dense<0.000000e+00> : vector<16x4xf32>
    %63 = tpu.matmul %62, %16, %cst_23 {dimension_numbers = #tpu.dot_dimension_numbers<[1], [0], [0], [1], [0, 0, 1, 1], [], []>} : vector<16x16xbf16>, vector<16x4xbf16>, vector<16x4xf32> -> vector<16x4xf32>
    %64 = arith.truncf %63 : vector<16x4xf32> to vector<16x4xbf16>
    %cst_24 = arith.constant dense<0.000000e+00> : vector<16x16xf32>
    %65 = tpu.matmul %64, %19, %cst_24 {dimension_numbers = #tpu.dot_dimension_numbers<[1], [0], [0], [1], [0, 0, 1, 1], [], []>} : vector<16x4xbf16>, vector<4x16xbf16>, vector<16x16xf32> -> vector<16x16xf32>
    %66 = arith.mulf %58, %65 : vector<16x16xf32>
    %67 = arith.truncf %66 : vector<16x16xf32> to vector<16x16xbf16>
    %cst_25 = arith.constant dense<0.000000e+00> : vector<16x4xf32>
    %68 = tpu.matmul %67, %17, %cst_25 {dimension_numbers = #tpu.dot_dimension_numbers<[1], [0], [0], [1], [0, 0, 1, 1], [], []>} : vector<16x16xbf16>, vector<16x4xbf16>, vector<16x4xf32> -> vector<16x4xf32>
    %cst_26 = arith.constant 9.99999974E-5 : f32
    %69 = vector.broadcast %cst_26 : f32 to vector<16x4xf32>
    %70 = arith.mulf %69, %1 : vector<16x4xf32>
    %71 = arith.addf %68, %70 : vector<16x4xf32>
    %72 = arith.mulf %65, %60 : vector<16x16xf32>
    %73 = vector.broadcast %21 : vector<1x16xf32> to vector<16x16xf32>
    %74 = arith.mulf %73, %72 : vector<16x16xf32>
    %75 = arith.negf %39 : vector<16x16xf32>
    %76 = math.exp %75 : vector<16x16xf32>
    %cst_27 = arith.constant 1.000000e+00 : f32
    %77 = vector.broadcast %cst_27 : f32 to vector<16x16xf32>
    %78 = arith.addf %77, %76 : vector<16x16xf32>
    %79 = arith.divf %77, %78 : vector<16x16xf32>
    %80 = arith.mulf %72, %79 : vector<16x16xf32>
    %81 = vector.broadcast %23 : vector<1x16xf32> to vector<16x16xf32>
    %82 = arith.mulf %81, %80 : vector<16x16xf32>
    %83 = arith.addf %74, %82 : vector<16x16xf32>
    %84 = arith.truncf %83 : vector<16x16xf32> to vector<16x16xbf16>
    %cst_28 = arith.constant dense<0.000000e+00> : vector<16x64xf32>
    %85 = tpu.matmul %84, %11, %cst_28 {dimension_numbers = #tpu.dot_dimension_numbers<[1], [0], [0], [1], [0, 0, 1, 1], [], []>} : vector<16x16xbf16>, vector<16x64xbf16>, vector<16x64xf32> -> vector<16x64xf32>
    %86 = vector.broadcast %13 : vector<1x64xf32> to vector<16x64xf32>
    %87 = arith.addf %85, %86 : vector<16x64xf32>
    %88 = vector.extract_strided_slice %33 {offsets = [0, 32], sizes = [16, 64], strides = [1, 1]} : vector<16x96xf32> to vector<16x64xf32>
    %89 = arith.mulf %88, %88 : vector<16x64xf32>
    %cst_29 = arith.constant 1.000000e+00 : f32
    %90 = vector.broadcast %cst_29 : f32 to vector<16x64xf32>
    %91 = arith.subf %90, %89 : vector<16x64xf32>
    %92 = arith.mulf %87, %91 : vector<16x64xf32>
    %93 = arith.truncf %92 : vector<16x64xf32> to vector<16x64xbf16>
    %cst_30 = arith.constant dense<0.000000e+00> : vector<16x64xf32>
    %94 = tpu.matmul %93, %14, %cst_30 {dimension_numbers = #tpu.dot_dimension_numbers<[1], [0], [0], [1], [0, 0, 1, 1], [], []>} : vector<16x64xbf16>, vector<64x64xbf16>, vector<16x64xf32> -> vector<16x64xf32>
    %95 = vector.extract_strided_slice %28 {offsets = [0, 32], sizes = [16, 64], strides = [1, 1]} : vector<16x96xf32> to vector<16x64xf32>
    %96 = arith.mulf %95, %95 : vector<16x64xf32>
    %cst_31 = arith.constant 1.000000e+00 : f32
    %97 = vector.broadcast %cst_31 : f32 to vector<16x64xf32>
    %98 = arith.subf %97, %96 : vector<16x64xf32>
    %99 = arith.mulf %94, %98 : vector<16x64xf32>
    %100 = arith.truncf %99 : vector<16x64xf32> to vector<16x64xbf16>
    %cst_32 = arith.constant dense<0.000000e+00> : vector<16x4xf32>
    %101 = tpu.matmul %100, %15, %cst_32 {dimension_numbers = #tpu.dot_dimension_numbers<[1], [0], [0], [1], [0, 0, 1, 1], [], []>} : vector<16x64xbf16>, vector<64x4xbf16>, vector<16x4xf32> -> vector<16x4xf32>
    %102 = vector.extract_strided_slice %38 {offsets = [0, 0], sizes = [16, 4], strides = [1, 1]} : vector<16x8xf32> to vector<16x4xf32>
    %103 = arith.addf %102, %71 : vector<16x4xf32>
    %c0_33 = arith.constant 0 : index
    %c0_34 = arith.constant 0 : index
    %104 = vector.load %arg3[%c0_33, %c0_34] : memref<16x8xf32, #tpu.memory_space<vmem>>, vector<16x4xf32>
    tpu.vector_store %arg3[%c0_33, %c0_34], %103 {strides = array<i32>} : memref<16x8xf32, #tpu.memory_space<vmem>>, vector<16x4xf32>,
    %105 = vector.extract_strided_slice %38 {offsets = [0, 4], sizes = [16, 4], strides = [1, 1]} : vector<16x8xf32> to vector<16x4xf32>
    %106 = arith.subf %105, %101 : vector<16x4xf32>
    %c0_35 = arith.constant 0 : index
    %c4 = arith.constant 4 : index
    %107 = vector.load %arg3[%c0_35, %c4] : memref<16x8xf32, #tpu.memory_space<vmem>>, vector<16x4xf32>
    tpu.vector_store %arg3[%c0_35, %c4], %106 {strides = array<i32>} : memref<16x8xf32, #tpu.memory_space<vmem>>, vector<16x4xf32>,
    return
  }
  func.func @transform_0(%arg0: i32) -> (i32, i32) {
    %c0_i32 = arith.constant 0 : i32
    %c0_i32_0 = arith.constant 0 : i32
    return %arg0, %c0_i32 : i32, i32
  }
  func.func @transform_1(%arg0: i32) -> (i32, i32) {
    %c0_i32 = arith.constant 0 : i32
    %c0_i32_0 = arith.constant 0 : i32
    %c0_i32_1 = arith.constant 0 : i32
    return %c0_i32, %c0_i32_0 : i32, i32
  }
  func.func @transform_2(%arg0: i32) -> (i32, i32) {
    %c0_i32 = arith.constant 0 : i32
    %c0_i32_0 = arith.constant 0 : i32
    return %arg0, %c0_i32 : i32, i32
  }
}

</mosaic_0001>

<bundles_post_ra>
// kernel: tpu_custom_call.1
= control target key start
LH: loop header
LB: loop body
LE: loop exit
PB: predicated region body
PF: predicated region fallthrough
CT: control target
= control target key end

     0   :  { %7 = vsyncpa [#allocation3], 0  ;;  %s1387_s9 = smov 0   ;;  %s1574_s0 = inlined_call_operand.vmem [shape: f32[32,8], index: 0, kind: input, shape index: {}]   ;;  %s1575_s1 = inlined_call_operand.hbm [shape: bf16[512,128], index: 1, kind: input, shape index: {}]   ;;  %s1576_s2 = inlined_call_operand.vmem [shape: f32[32,8], index: 2, kind: output, shape index: {}]  }
   0x1 LB: > { %s1075_s10 = sadd.s32 4294967295, %s1361_s9   ;;  %p1077_p0 = scmp.ge.s32.totalorder %s1361_s9, 1  ;;  %s1361_s9 = sphi %s1387_s9, %s13_s9  }
   0x2   : > { %p91_p1 = scmp.lt.s32.totalorder %s1361_s9, 3  ;;  %s1363_s11 = smov [#allocation2]  }
   0x3   : > { %s103_s12 = sshll.u32 %s1363_s11, 4  ;;  %p1399_p3 = scmp.eq.s32.totalorder %s1075_s10, 0  ;;  %s104_s12 = int_to_ptr.vmem [resolvable:$true] %s103_s12 }
   0x4   : > { %p1395_p2 = pnand %p1077_p0, %p91_p1  ;;  %s1336_s15 = scalar_lea.vmem %s104_s12, 4096 }
   0x5   : > { %p1337_p7 = scmp.ne.s32.totalorder %s104_s12, %s1336_s15  ;;  %p1344_p10 = scmp.lt.s32.totalorder %s104_s12, %s104_s12 }
   0x6   : > { %p1255_p4 = pneg %p1395_p2  ;;  %p1345_p11 = scmp.lt.s32.totalorder %s1336_s15, %s1336_s15 }
   0x8   : > { %p1256_p5 = pnand %p1399_p3, %p1255_p4  ;;  %p1346_p12 = por %p1345_p11, %p1344_p10 }
   0xa   : > { %p1327_p6 = pneg %p1256_p5 }
   0xc   : > { %p1339_p8 = pnand %p1337_p7, %p1327_p6 }
   0xe   : > { %p1340_p9 = pneg %p1339_p8 }
  0x10   : > { %p1347_p13 = pnand %p1346_p12, %p1340_p9 }
  0x12   : > { %1350 = shalt.err (!%p1347_p13)
}
  0x13   : > { %s1364_s16 = smov 64   ;;  %s1365_s17 = smov 4  }
  0x14   : > { %1258 = dma.hbm_to_vmem [thread:$0]  (!%p1256_p5), %s1575_s1, 4096, %s104_s12, [#allocation3], %s1364_s16, %s1364_s16, %s1365_s17  }
  0x15   : > { %128 = sbr.rel (%p1395_p2) target bundleno = 1955 (0x7a3), region = 28 }
  0x1a   : > { %1356 = dma.done.wait (%p1399_p3), [#allocation3], 4096  }
  0x1b   : > { %1358 = vsyncadd (%p1399_p3), [#allocation3], 4294963200  ;;  %s1082_s20 = sshll.u32 %s1075_s10, 1  ;;  %v1366_v0 = vmov 0.0   ;;  %vm1367_vm0 = vmmov 0   ;;  %vm235_vm1 = vcmask 1043456   ;;  %v227_v12 = vlaneseq }
  0x1c   : > { %1159 = vmatprep.subr.bf16.mxu0 %v1366_v0  ;;  %1161 = vmatprep.mubr.msk.bf16.mxu0 %vm1367_vm0, %v1366_v0  ;;  %p151_p0 = scmp.lt.s32.totalorder %s1082_s20, 3  ;;  %v165_v1 = vld [vmem:[#allocation2] sm:$0xf]  ;;  %vm231_vm2 = vcmask 64512   ;;  %v1278_v6 = vld [vmem:[#allocation2 + $0x30] sm:$0xff]   ;;  %v1279_v7 = vld [vmem:[#allocation2 + $0x28] sm:$0xff]  }
  0x1d   : > { %1165 = vmatprep.subr.bf16.mxu1 %v1366_v0  ;;  %1177 = vmatprep.mubr.msk.bf16.mxu1 %vm1367_vm0, %v1366_v0  ;;  %v237_v4 = vsel %vm235_vm1, %v165_v1, 0  ;;  %v1280_v8 = vld [vmem:[#allocation2 + $0x20] sm:$0xff]   ;;  %v1281_v9 = vld [vmem:[#allocation2 + $0x18] sm:$0xff]   ;;  %v1282_v10 = vld [vmem:[#allocation2 + $0x10] sm:$0xff]   ;;  %v228_v13 = vshrl.u32 %v227_v12, 7  ;;  %vm323_vm3 = vcmask 785408  }
  0x1e   : > { %s1580_s20 = smov (!%p151_p0, %s1082_s20), 3  ;;  %1160 = vmatpush3.bf16.msra.mxu0 %v237_v4  ;;  %1166 = vmatpush3.bf16.msra.mxu1 %v1278_v6  ;;  %v1283_v11 = vld [vmem:[#allocation2 + $0x8] sm:$0xff]   ;;  %v1284_v27 = vld [vmem:[#allocation2 + $0x60] sm:$0xff]   ;;  %v1285_v28 = vld [vmem:[#allocation2 + $0x58] sm:$0xff]   ;;  %vm528_vm4 = vcmask 1041408   ;;  %s1368_s25 = smov 124  }
  0x1f   : > { %s1083_s21 = sshll.u32 %s1580_s20, 3  ;;  %1181 = vmatprep.subr.bf16.mxu0 %v1366_v0  ;;  %1167 = vmatprep.subr.bf16.mxu1 %v1366_v0  ;;  %v190_v14 = vld [vmem:[#allocation2 + $0x68] sm:$0x1]  ;;  %v1448_v16 = vsub.s32 0, %v228_v13  ;;  %v1286_v29 = vld [vmem:[#allocation2 + $0x50] sm:$0xff]   ;;  %v1288_v31 = vld [vmem:[#allocation2 + $0x40] sm:$0xff]  }
  0x20   : > { %s154_s24 = scalar_lea.vmem %s1574_s0, %s1083_s21  ;;  %v191_v15 = vunpack.c.l.bf16 %v190_v14  ;;  %v1287_v30 = vld [vmem:[#allocation2 + $0x48] sm:$0xff]   ;;  %v1289_v32 = vld [vmem:[#allocation2 + $0x38] sm:$0xff]   ;;  %v220_v33 = vld [vmem:[#allocation2 + $0xe0] sm:$0x3]  ;;  %vm524_vm5 = vcmask 31744   ;;  %s1369_s26 = smov 119  }
  0x21   : > { %v1430_v2 = vld [vmem:[%s154_s24] sm:$0xff]  ;;  %v1432_v3 = vld [vmem:[%s154_s24 + $0x8] sm:$0xff]  ;;  %v530_v34 = vsel %vm528_vm4, %v220_v33, 0  ;;  %v192_v35 = vld [vmem:[#allocation2 + $0x70] sm:$0x1]  ;;  %s1370_s27 = smov 96   ;;  %s1557_s30 = scalar_lea.vmem %s1576_s2, %s1083_s21 }
  0x22   : > { %v1436_v5 = vpack.c.bf16 %v1432_v3, %v1430_v2  ;;  %1168 = vmatpush3.bf16.msra.mxu1 %v1279_v7  ;;  %v230_v17 = vrot.slane %v191_v15, %v1448_v16  ;;  %v193_v36 = vunpack.c.l.bf16 %v192_v35  ;;  %v194_v48 = vld [vmem:[#allocation2 + $0x78] sm:$0x1]  ;;  %vm582_vm10 = vcmask 130048   ;;  %s1371_s3 = smov 4  }
  0x23   : > { %1169 = vmatprep.subr.bf16.mxu1 %v1366_v0  ;;  %v195_v49 = vunpack.c.l.bf16 %v194_v48  ;;  %vm862_vm11 = vcmask 523264   ;;  %vm1004_vm12 = vcmask 64544  }
  0x24   : > { %1162 = vmatmul.mubr.msk.bf16.vlgmr.msra.gmra.mxu0 %vm231_vm2, %v1436_v5  ;;  %522 = vrot.lane.b32.xlu0 %v1436_v5, %s1368_s25  ;;  %v286_v37 = vrot.slane %v193_v36, %v1448_v16 }
  0x25   : > { %1193 = vmatprep.mubr.msk.bf16.mxu0 %vm1367_vm0, %v1366_v0  ;;  %1182 = vmatpush3.bf16.msra.mxu0 %v1284_v27  ;;  %v374_v52 = vrot.slane %v195_v49, %v1448_v16 }
  0x26   : > { %1170 = vmatpush3.bf16.msra.mxu1 %v1280_v8  ;;  %1183 = vmatprep.subr.bf16.mxu0 %v1366_v0 }
  0x27   : > { %1171 = vmatprep.subr.bf16.mxu1 %v1366_v0 }
  0x29   : > { %1184 = vmatpush3.bf16.msra.mxu0 %v1285_v28 }
  0x2a   : > { %1172 = vmatpush3.bf16.msra.mxu1 %v1281_v9  ;;  %1185 = vmatprep.subr.bf16.mxu0 %v1366_v0 }
  0x2b   : > { %1173 = vmatprep.subr.bf16.mxu1 %v1366_v0 }
  0x2d   : > { %1186 = vmatpush3.bf16.msra.mxu0 %v1286_v29  ;;  %v1290_v29 = vld [vmem:[#allocation2 + $0xd0] sm:$0xff]  }
  0x2e   : > { %1174 = vmatpush3.bf16.msra.mxu1 %v1282_v10  ;;  %1187 = vmatprep.subr.bf16.mxu0 %v1366_v0 }
  0x2f   : > { %1175 = vmatprep.subr.bf16.mxu1 %v1366_v0 }
  0x31   : > { %1188 = vmatpush3.bf16.msra.mxu0 %v1287_v30 }
  0x32   : > { %1176 = vmatpush3.bf16.msra.mxu1 %v1283_v11  ;;  %1189 = vmatprep.subr.bf16.mxu0 %v1366_v0 }
  0x33   : > { %1197 = vmatprep.subr.bf16.mxu1 %v1366_v0 }
  0x35   : > { %1190 = vmatpush3.bf16.msra.mxu0 %v1288_v31 }
  0x36   : > { %1191 = vmatprep.subr.bf16.mxu0 %v1366_v0 }
  0x39   : > { %1192 = vmatpush3.bf16.msra.mxu0 %v1289_v32 }
  0x3a   : > { %1203 = vmatprep.subr.bf16.mxu0 %v1366_v0 }
  0x96   : > { %v523_v44 = vpop.permute.xlu0 %522 }
  0xe4   : > { %v273_v18 = vpop.f32.mrf.mxu0 }
  0xe5   : > { %v274_v19 = vadd.f32 %v273_v18, %v230_v17 }
  0xe6   : > { %v1163_v20 = vpop.f32.mrf.mxu0 }
  0xe7   : > { %1301 = vtanh.f32 %v274_v19 }
  0xe8   : > { %v276_v21 = vpop.f32.mrf.mxu0 }
  0xe9   : > { %v277_v22 = vadd.f32 %v276_v21, %v230_v17 }
  0xea   : > { %v1164_v23 = vpop.f32.mrf.mxu0 }
  0xeb   : > { %1303 = vtanh.f32 %v277_v22 }
  0xf4   : > { %v1451_v24 = vpop.eup %1301 }
  0xf8   : > { %v1453_v25 = vpop.eup %1303 }
  0xf9   : > { %v282_v26 = vpack.c.bf16 %v1453_v25, %v1451_v24 }
  0xfb   : > { %1178 = vmatmul.mubr.msk.bf16.vlgmr.msra.gmra.mxu1 %vm323_vm3, %v282_v26 }
  0xfc   : > { %1199 = vmatprep.mubr.msk.bf16.mxu1 %vm1367_vm0, %v1366_v0  ;;  %1198 = vmatpush3.bf16.msra.mxu1 %v530_v34 }
  0xfd   : > { %1209 = vmatprep.subr.bf16.mxu1 %v1366_v0 }
 0x103   : > { %1200 = vmatmul.mubr.msk.bf16.vlgmr.msra.gmra.mxu1 %vm524_vm5, %v523_v44 }
 0x104   : > { %1211 = vmatprep.mubr.msk.bf16.mxu1 %vm1367_vm0, %v1366_v0 }
 0x1bb   : > { %v361_v38 = vpop.f32.mrf.mxu1 }
 0x1bc   : > { %v362_v39 = vadd.f32 %v361_v38, %v286_v37 }
 0x1bd   : > { %v1179_v40 = vpop.f32.mrf.mxu1 }
 0x1be   : > { %1305 = vtanh.f32 %v362_v39  ;;  %v221_v40 = vld [vmem:[#allocation2 + $0xe8] sm:$0x3] }
 0x1bf   : > { %v364_v41 = vpop.f32.mrf.mxu1 }
 0x1c0   : > { %v365_v42 = vadd.f32 %v364_v41, %v286_v37 }
 0x1c1   : > { %v1180_v43 = vpop.f32.mrf.mxu1 }
 0x1c2   : > { %1307 = vtanh.f32 %v365_v42  ;;  %v632_v43 = vsel %vm528_vm4, %v221_v40, 0 }
 0x1c3   : > { %v1483_v50 = vpop.f32.mrf.mxu1  ;;  %1210 = vmatpush3.bf16.msra.mxu1 %v632_v43  ;;  %v1296_v43 = vld [vmem:[#allocation2 + $0x90] sm:$0xff]  }
 0x1c4   : > { %1221 = vmatprep.subr.bf16.mxu1 %v1366_v0 }
 0x1c5   : > { %v1201_v51 = vpop.f32.mrf.mxu1 }
 0x1c7   : > { %v1498_v14 = vpop.f32.mrf.mxu1 }
 0x1c9   : > { %v1202_v20 = vpop.f32.mrf.mxu1 }
 0x1ca   : > { %v678_v20 = vmul.f32 0.0001, %v1430_v2 }
 0x1cb   : > { %v1474_v45 = vpop.eup %1305 }
 0x1cc   : > { %v823_v39 = vmul.f32 %v1474_v45, %v1474_v45 }
 0x1ce   : > { %v825_v44 = vsub.f32 1.0, %v823_v39 }
 0x1cf   : > { %v1476_v46 = vpop.eup %1307 }
 0x1d0   : > { %v370_v47 = vpack.c.bf16 %v1476_v46, %v1474_v45  ;;  %v824_v48 = vmul.f32 %v1476_v46, %v1476_v46 }
 0x1d2   : > { %1194 = vmatmul.mubr.msk.bf16.vlgmr.msra.gmra.mxu0 %vm323_vm3, %v370_v47  ;;  %v907_v47 = vmul.f32 %v1451_v24, %v1451_v24  ;;  %v826_v51 = vsub.f32 1.0, %v824_v48  ;;  %v224_v24 = vld [vmem:[#allocation2 + $0xf8] sm:$0x1] }
 0x1d3   : > { %1205 = vmatprep.mubr.msk.bf16.mxu0 %vm1367_vm0, %v1366_v0  ;;  %1204 = vmatpush3.bf16.msra.mxu0 %v1290_v29 }
 0x1d4   : > { %1215 = vmatprep.subr.bf16.mxu0 %v1366_v0  ;;  %v909_v49 = vsub.f32 1.0, %v907_v47  ;;  %v1298_v47 = vld [vmem:[#allocation2 + $0xc0] sm:$0xff]  }
 0x292   : > { %v448_v53 = vpop.f32.mrf.mxu0 }
 0x293   : > { %v1486_v54 = vadd.f32 %v448_v53, %v374_v52 }
 0x294   : > { %v1195_v55 = vpop.f32.mrf.mxu0 }
 0x295   : > { %v475_v56 = vand.u32 2147483647, %v1486_v54  ;;  %461 = vrot.lane.b32.xlu0 %v1486_v54, %s1369_s26  ;;  %v1107_v1 = vmul.f32 -1.442695, %v1486_v54  ;;  %v469_v27 = vmax.f32 %v1486_v54, 0.0  ;;  %vm471_vm7 = vcmp.ne.f32.partialorder %v1486_v54, %v1486_v54 }
 0x296   : > { %v451_v57 = vpop.f32.mrf.mxu0  ;;  %v222_v55 = vld [vmem:[#allocation2 + $0xf0] sm:$0x1] }
 0x297   : > { %v477_v58 = vsub.f32 0.0, %v475_v56  ;;  %v1491_v59 = vadd.f32 %v451_v57, %v374_v52  ;;  %v908_v52 = vmul.f32 %v1453_v25, %v1453_v25  ;;  %v225_v56 = vunpack.c.l.bf16 %v224_v24 }
 0x298   : > { %v1196_v60 = vpop.f32.mrf.mxu0  ;;  %v223_v46 = vunpack.c.l.bf16 %v222_v55 }
 0x299   : > { %v479_v61 = vmul.f32 1.442695, %v477_v58  ;;  %v476_v62 = vand.u32 2147483647, %v1491_v59  ;;  %463 = vrot.lane.b32.xlu1 %v1491_v59, %s1369_s26  ;;  %v1108_v5 = vmul.f32 -1.442695, %v1491_v59  ;;  %vm472_vm9 = vcmp.ne.f32.partialorder %v1491_v59, %v1491_v59 }
 0x29a   : > { %v470_v36 = vmax.f32 %v1491_v59, 0.0  ;;  %v910_v53 = vsub.f32 1.0, %v908_v52  ;;  %v508_v58 = vrot.slane %v225_v56, %v1448_v16  ;;  %v458_v60 = vrot.slane %v223_v46, %v1448_v16 }
 0x29b   : > { %1309 = vpow2.f32 %v479_v61  ;;  %v478_v63 = vsub.f32 0.0, %v476_v62 }
 0x29d   : > { %v481_v4 = vmul.f32 1.442695, %v478_v63 }
 0x29f   : > { %1311 = vpow2.f32 %v481_v4 }
 0x2a0   : > { %1313 = vpow2.f32 %v1107_v1 }
 0x2a1   : > { %1315 = vpow2.f32 %v1108_v5 }
 0x2a8   : > { %v1310_v6 = vpop.eup %1309 }
 0x2a9   : > { %v483_v7 = vadd.f32 1.0, %v1310_v6  ;;  %v486_v11 = vmul.f32 -0.5, %v1310_v6  ;;  %v489_v19 = vand.u32 2147483647, %v1310_v6 }
 0x2ab   : > { %1317 = vlog2.f32 %v483_v7  ;;  %v487_v15 = vadd.f32 1.0, %v486_v11  ;;  %vm490_vm6 = vcmp.lt.f32.partialorder %v489_v19, 0.0004427343  ;;  %v1292_v19 = vld [vmem:[#allocation2 + $0x80] sm:$0xff]  }
 0x2ac   : > { %v1312_v8 = vpop.eup %1311 }
 0x2ad   : > { %v492_v9 = vadd.f32 1.0, %v1312_v8  ;;  %v1314_v10 = vpop.eup %1313  ;;  %v495_v17 = vmul.f32 -0.5, %v1312_v8  ;;  %v488_v23 = vmul.f32 %v1310_v6, %v487_v15  ;;  %v498_v28 = vand.u32 2147483647, %v1312_v8 }
 0x2ae   : > { %v748_v12 = vadd.f32 1.0, %v1314_v10  ;;  %v1316_v13 = vpop.eup %1315 }
 0x2af   : > { %1319 = vlog2.f32 %v492_v9  ;;  %v749_v18 = vadd.f32 1.0, %v1316_v13  ;;  %v496_v26 = vadd.f32 1.0, %v495_v17  ;;  %vm499_vm8 = vcmp.lt.f32.partialorder %v498_v28, 0.0004427343 }
 0x2b0   : > { %1321 = vrcp.f32 %v748_v12 }
 0x2b1   : > { %1323 = vrcp.f32 %v749_v18  ;;  %v497_v34 = vmul.f32 %v1312_v8, %v496_v26  ;;  %v1291_v18 = vld [vmem:[#allocation2 + $0xd8] sm:$0xff]  }
 0x2b8   : > { %v1318_v21 = vpop.eup %1317 }
 0x2b9   : > { %v485_v22 = vmul.f32 0.6931472, %v1318_v21  ;;  %v679_v21 = vmul.f32 0.0001, %v1432_v3 }
 0x2bb   : > { %v491_v30 = vsel %vm490_vm6, %v488_v23, %v485_v22 }
 0x2bc   : > { %v1320_v31 = vpop.eup %1319  ;;  %v501_v32 = vadd.f32 %v491_v30, %v469_v27 }
 0x2bd   : > { %v494_v33 = vmul.f32 0.6931472, %v1320_v31  ;;  %v1322_v41 = vpop.eup %1321 }
 0x2be   : > { %v503_v35 = vsel %vm471_vm7, %v1486_v54, %v501_v32  ;;  %v1324_v45 = vpop.eup %1323 }
 0x2bf   : > { %511 = vrot.lane.b32.xlu1 %v503_v35, %s1369_s26  ;;  %v500_v37 = vsel %vm499_vm8, %v497_v34, %v494_v33 }
 0x2c0   : > { %v502_v38 = vadd.f32 %v500_v37, %v470_v36 }
 0x2c2   : > { %v504_v42 = vsel %vm472_vm9, %v1491_v59, %v502_v38 }
 0x2c3   : > { %756 = vrot.lane.b32.xlu1 %v1322_v41, %s1369_s26  ;;  %513 = vrot.lane.b32.xlu0 %v504_v42, %s1369_s26  ;;  %v1294_v41 = vld [vmem:[#allocation2 + $0xa0] sm:$0xff]   ;;  %v1295_v42 = vld [vmem:[#allocation2 + $0x98] sm:$0xff]  }
 0x2c7   : > { %829 = vrot.lane.b32.xlu1 %v825_v44, %s1370_s27  ;;  %758 = vrot.lane.b32.xlu0 %v1324_v45, %s1369_s26  ;;  %v1297_v44 = vld [vmem:[#allocation2 + $0xc8] sm:$0xff]  }
 0x2cb   : > { %913 = vrot.lane.b32.xlu1 %v909_v49, %s1370_s27  ;;  %831 = vrot.lane.b32.xlu0 %v826_v51, %s1370_s27 }
 0x2cf   : > { %915 = vrot.lane.b32.xlu0 %v910_v53, %s1370_s27  ;;  %688 = vrot.lane.b32.xlu1 %v678_v20, %s1368_s25  ;;  %v198_v53 = vld [vmem:[#allocation2 + $0x88] sm:$0x1] }
 0x2d0   : > { %v199_v56 = vunpack.c.l.bf16 %v198_v53 }
 0x2d3   : > { %690 = vrot.lane.b32.xlu0 %v679_v21, %s1368_s25 }
 0x307   : > { %v462_v61 = vpop.permute.xlu0 %461 }
 0x308   : > { %v467_v1 = vmul.f32 %v462_v61, %v458_v60 }
 0x30b   : > { %v464_v57 = vpop.permute.xlu1 %463 }
 0x30c   : > { %v468_v5 = vmul.f32 %v464_v57, %v458_v60 }
 0x331   : > { %v512_v62 = vpop.permute.xlu1 %511 }
 0x332   : > { %v517_v63 = vmul.f32 %v512_v62, %v508_v58  ;;  %v772_v62 = vrot.slane %v199_v56, %v1448_v16  ;;  %v1300_v16 = vld [vmem:[#allocation2 + $0xb0] sm:$0xff]  }
 0x334   : > { %v519_v25 = vadd.f32 %v517_v63, %v467_v1 }
 0x335   : > { %v514_v4 = vpop.permute.xlu0 %513  ;;  %v757_v26 = vpop.permute.xlu1 %756 }
 0x336   : > { %v518_v6 = vmul.f32 %v514_v4, %v508_v58  ;;  %v573_v8 = vmul.f32 %v1483_v50, %v519_v25 }
 0x338   : > { %v520_v7 = vadd.f32 %v518_v6, %v468_v5 }
 0x339   : > { %v759_v33 = vpop.permute.xlu0 %758  ;;  %v830_v48 = vpop.permute.xlu1 %829 }
 0x33a   : > { %v574_v9 = vmul.f32 %v1498_v14, %v520_v7 }
 0x33c   : > { %v575_v10 = vpack.c.bf16 %v574_v9, %v573_v8 }
 0x33d   : > { %v832_v45 = vpop.permute.xlu0 %831  ;;  %v914_v49 = vpop.permute.xlu1 %913 }
 0x33e   : > { %1206 = vmatmul.mubr.msk.bf16.vlgmr.msra.gmra.mxu0 %vm582_vm10, %v575_v10 }
 0x33f   : > { %1217 = vmatprep.mubr.msk.bf16.mxu0 %vm1367_vm0, %v1366_v0  ;;  %1216 = vmatpush3.bf16.msra.mxu0 %v1291_v18 }
 0x340   : > { %1227 = vmatprep.subr.bf16.mxu0 %v1366_v0 }
 0x341   : > { %v916_v51 = vpop.permute.xlu0 %915  ;;  %v689_v52 = vpop.permute.xlu1 %688 }
 0x345   : > { %v691_v57 = vpop.permute.xlu0 %690 }
 0x3fe   : > { %v620_v11 = vpop.f32.mrf.mxu0 }
 0x400   : > { %v1207_v12 = vpop.f32.mrf.mxu0 }
 0x401   : > { %v1299_v12 = vld [vmem:[#allocation2 + $0xb8] sm:$0xff]  }
 0x402   : > { %v623_v13 = vpop.f32.mrf.mxu0 }
 0x403   : > { %v627_v15 = vpack.c.bf16 %v623_v13, %v620_v11 }
 0x404   : > { %v1208_v17 = vpop.f32.mrf.mxu0 }
 0x405   : > { %1212 = vmatmul.mubr.msk.bf16.vlgmr.msra.gmra.mxu1 %vm524_vm5, %v627_v15 }
 0x406   : > { %1223 = vmatprep.mubr.msk.bf16.mxu1 %vm1367_vm0, %v1366_v0  ;;  %1222 = vmatpush3.bf16.msra.mxu1 %v1292_v19 }
 0x407   : > { %1239 = vmatprep.subr.bf16.mxu1 %v1366_v0 }
 0x4c5   : > { %v668_v22 = vpop.f32.mrf.mxu1 }
 0x4c6   : > { %v738_v23 = vmul.f32 %v668_v22, %v1483_v50  ;;  %v675_v30 = vmul.f32 %v668_v22, %v519_v25 }
 0x4c7   : > { %v1213_v27 = vpop.f32.mrf.mxu1 }
 0x4c8   : > { %v762_v28 = vmul.f32 %v757_v26, %v738_v23  ;;  %v740_v36 = vmul.f32 %v738_v23, %v458_v60 }
 0x4c9   : > { %v671_v29 = vpop.f32.mrf.mxu1 }
 0x4ca   : > { %v676_v31 = vmul.f32 %v671_v29, %v520_v7  ;;  %v739_v32 = vmul.f32 %v671_v29, %v1498_v14  ;;  %v764_v2 = vmul.f32 %v762_v28, %v508_v58  ;;  %v1293_v14 = vld [vmem:[#allocation2 + $0xa8] sm:$0xff]  }
 0x4cb   : > { %v1214_v34 = vpop.f32.mrf.mxu1 }
 0x4cc   : > { %v677_v35 = vpack.c.bf16 %v676_v31, %v675_v30  ;;  %v763_v3 = vmul.f32 %v759_v33, %v739_v32  ;;  %v741_v37 = vmul.f32 %v739_v32, %v458_v60  ;;  %v766_v50 = vadd.f32 %v764_v2, %v740_v36 }
 0x4ce   : > { %v765_v38 = vmul.f32 %v763_v3, %v508_v58  ;;  %1218 = vmatmul.mubr.msk.bf16.vlgmr.msra.gmra.mxu0 %vm582_vm10, %v677_v35 }
 0x4cf   : > { %1235 = vmatprep.mubr.msk.bf16.mxu0 %vm1367_vm0, %v1366_v0  ;;  %1228 = vmatpush3.bf16.msra.mxu0 %v1293_v14 }
 0x4d0   : > { %v767_v39 = vadd.f32 %v765_v38, %v741_v37  ;;  %1229 = vmatprep.subr.bf16.mxu0 %v1366_v0 }
 0x4d2   : > { %v768_v40 = vpack.c.bf16 %v767_v39, %v766_v50 }
 0x4d3   : > { %1230 = vmatpush3.bf16.msra.mxu0 %v1294_v41 }
 0x4d4   : > { %1224 = vmatmul.mubr.msk.bf16.vlgmr.msra.gmra.mxu1 %vm582_vm10, %v768_v40  ;;  %1231 = vmatprep.subr.bf16.mxu0 %v1366_v0 }
 0x4d5   : > { %1247 = vmatprep.mubr.msk.bf16.mxu1 %vm1367_vm0, %v1366_v0  ;;  %1240 = vmatpush3.bf16.msra.mxu1 %v1297_v44 }
 0x4d6   : > { %1241 = vmatprep.subr.bf16.mxu1 %v1366_v0 }
 0x4d7   : > { %1232 = vmatpush3.bf16.msra.mxu0 %v1295_v42 }
 0x4d8   : > { %1233 = vmatprep.subr.bf16.mxu0 %v1366_v0 }
 0x4d9   : > { %1242 = vmatpush3.bf16.msra.mxu1 %v1298_v47 }
 0x4da   : > { %1243 = vmatprep.subr.bf16.mxu1 %v1366_v0 }
 0x4db   : > { %1234 = vmatpush3.bf16.msra.mxu0 %v1296_v43 }
 0x4dd   : > { %1244 = vmatpush3.bf16.msra.mxu1 %v1299_v12 }
 0x4de   : > { %1245 = vmatprep.subr.bf16.mxu1 %v1366_v0 }
 0x4e1   : > { %1246 = vmatpush3.bf16.msra.mxu1 %v1300_v16 }
 0x58e   : > { %v731_v24 = vpop.f32.mrf.mxu0 }
 0x58f   : > { %v732_v55 = vadd.f32 %v731_v24, %v689_v52 }
 0x590   : > { %v1219_v46 = vpop.f32.mrf.mxu0 }
 0x591   : > { %v990_v58 = vadd.f32 %v732_v55, %v1486_v54 }
 0x592   : > { %v734_v60 = vpop.f32.mrf.mxu0 }
 0x593   : > { %992 = vst.msk [vmem:[%s1557_s30] sm:$0xff] %vm524_vm5, %v990_v58  ;;  %v735_v61 = vadd.f32 %v734_v60, %v691_v57 }
 0x594   : > { %v1220_v63 = vpop.f32.mrf.mxu0  ;;  %v816_v1 = vpop.f32.mrf.mxu1 }
 0x595   : > { %v991_v4 = vadd.f32 %v735_v61, %v1491_v59  ;;  %v817_v25 = vadd.f32 %v816_v1, %v772_v62 }
 0x596   : > { %v1225_v5 = vpop.f32.mrf.mxu1 }
 0x597   : > { %993 = vst.msk [vmem:[%s1557_s30 + $0x8] sm:$0xff] %vm524_vm5, %v991_v4  ;;  %v835_v9 = vmul.f32 %v830_v48, %v817_v25 }
 0x598   : > { %v819_v6 = vpop.f32.mrf.mxu1 }
 0x599   : > { %v820_v7 = vadd.f32 %v819_v6, %v772_v62 }
 0x59a   : > { %v1226_v8 = vpop.f32.mrf.mxu1 }
 0x59b   : > { %v836_v10 = vmul.f32 %v832_v45, %v820_v7 }
 0x59d   : > { %v837_v11 = vpack.c.bf16 %v836_v10, %v835_v9 }
 0x59f   : > { %1236 = vmatmul.mubr.msk.bf16.vlgmr.msra.gmra.mxu0 %vm862_vm11, %v837_v11 }
 0x65f   : > { %v900_v13 = vpop.f32.mrf.mxu0 }
 0x660   : > { %v919_v18 = vmul.f32 %v914_v49, %v900_v13 }
 0x661   : > { %v1237_v15 = vpop.f32.mrf.mxu0 }
 0x663   : > { %v903_v17 = vpop.f32.mrf.mxu0 }
 0x664   : > { %v920_v19 = vmul.f32 %v916_v51, %v903_v17 }
 0x665   : > { %v1238_v20 = vpop.f32.mrf.mxu0 }
 0x666   : > { %v921_v21 = vpack.c.bf16 %v920_v19, %v919_v18 }
 0x668   : > { %1248 = vmatmul.mubr.msk.bf16.vlgmr.msra.gmra.mxu1 %vm862_vm11, %v921_v21 }
 0x728   : > { %v983_v22 = vpop.f32.mrf.mxu1 }
 0x729   : > { %996 = vrot.lane.b32.xlu1 %v983_v22, %s1371_s3 }
 0x72a   : > { %v1249_v23 = vpop.f32.mrf.mxu1 }
 0x72c   : > { %v986_v26 = vpop.f32.mrf.mxu1 }
 0x72d   : > { %998 = vrot.lane.b32.xlu0 %v986_v26, %s1371_s3 }
 0x72e   : > { %v1250_v27 = vpop.f32.mrf.mxu1 }
 0x79b   : > { %v997_v0 = vpop.permute.xlu1 %996 }
 0x79c   : > { %v1002_v28 = vsub.f32 %v1486_v54, %v997_v0 }
 0x79e   : > { %1005 = vst.msk [vmem:[%s1557_s30] sm:$0xff] %vm1004_vm12, %v1002_v28 }
 0x79f   : > { %v999_v29 = vpop.permute.xlu0 %998 }
 0x7a0   : > { %v1003_v30 = vsub.f32 %v1491_v59, %v999_v29 }
 0x7a2   : > { %1006 = vst.msk [vmem:[%s1557_s30 + $0x8] sm:$0xff] %vm1004_vm12, %v1003_v30 }
 0x7a3 PF: > { %s13_s9 = sadd.s32 1, %s1361_s9  }
 0x7a4   : > { %p10_p1 = scmp.ge.s32.totalorder %s13_s9, 4  }
 0x7a6   :  { %12 = sbr.rel (!%p10_p1) target bundleno = 1 (0x1), region = 63 }
 0x7ab   :  { %1029 = vsyncpa [#allocation3], 1 }
 0x7ac   :  { %1031 = vsyncpa [#allocation3 + $0x1], 1 }

</bundles_post_ra>
